<compile_context>
chip_gen: v7x
topology: tpu7x:2x2x1
jax: 0.10.0
libtpu: 0.0.40
codegen_flags: <defaults>
</compile_context>

<pallas_src>
import jax
import jax.numpy as jnp
from jax import lax
from jax.experimental import pallas as pl
from jax.experimental.pallas import tpu as pltpu


def _round_up(x, m):
    return ((x + m - 1) // m) * m


def _softplus(x):
    # numerically stable softplus: max(x,0) + log1p(exp(-|x|))
    return jnp.maximum(x, 0.0) + jnp.log1p(jnp.exp(-jnp.abs(x)))


def _transcendental_dtype(in_dtype):
    """bf16 exp/log1p only on chips with a bf16 EUP (v6e/v7x); f32 otherwise."""
    if jnp.dtype(in_dtype) != jnp.dtype(jnp.bfloat16):
        return jnp.float32
    try:
        kind = jax.devices()[0].device_kind.lower()
    except Exception:
        return jnp.float32
    if ("v6" in kind) or ("v7" in kind):
        return jnp.bfloat16
    return jnp.float32


def _make_partial_kernel(blk, last_valid_rows, compute_dtype):
    """Kernel emitting one dense (8,128) f32 partial-sum block per grid step."""
    need_mask = last_valid_rows < blk   # only the trailing block can be partial

    def _partial(x, valid_rows):
        sp = _softplus(x.astype(compute_dtype))
        if valid_rows is not None:
            row = lax.broadcasted_iota(jnp.int32, sp.shape, 0)
            sp = jnp.where(row < valid_rows, sp, jnp.zeros_like(sp))
        sp = sp.astype(jnp.float32)                      # accumulate in f32
        # (blk,128) -> (blk//8, 8, 128) is a layout no-op for f32; sum over the
        # leading axis is plain vreg-wise VALU adds (no XLU reduce).
        return jnp.sum(sp.reshape(blk // 8, 8, 128), axis=0)

    def kernel(neg_ref, out_ref):
        if not need_mask:
            out_ref[...] = _partial(neg_ref[...], None)
        else:
            i = pl.program_id(0)
            last = pl.num_programs(0) - 1

            @pl.when(i != last)
            def _():
                out_ref[...] = _partial(neg_ref[...], None)

            @pl.when(i == last)
            def _():
                # rows beyond the array extent hold unspecified VMEM; mask them
                # out (cold path, runs once).
                out_ref[...] = _partial(neg_ref[...], last_valid_rows)

    return kernel


def softplus_score_mean(p_score, n_score, *, block_rows=4096):
    """mean(softplus(cat(-p_score, n_score))) with n_score streamed via Pallas."""
    p_flat = p_score.reshape(-1).astype(jnp.float32)
    n_flat = n_score.reshape(-1)
    n_pos = p_flat.shape[0]
    n_neg = n_flat.shape[0]

    in_dtype = n_flat.dtype
    row_align = 16 if jnp.dtype(in_dtype).itemsize <= 2 else 8   # (16,128) bf16 tiles
    super_elems = row_align * 128

    main_elems = (n_neg // super_elems) * super_elems
    rows = main_elems // 128

    # Batch-sized positive scores: plain JAX (keeps the kernel hot loop free of
    # the sublane-sparse (1,P) block and per-step branches).
    total = jnp.sum(jax.nn.softplus(-p_flat))

    # Ragged tail (< row_align*128 elements): plain JAX, so no full-array pad
    # copy is needed just to make n_score reshapeable.
    if main_elems < n_neg:
        tail = n_flat[main_elems:].astype(jnp.float32)
        total = total + jnp.sum(jax.nn.softplus(tail))

    if rows > 0:
        block_rows = max(row_align, (block_rows // row_align) * row_align)
        blk = min(block_rows, rows)
        if blk == rows and rows >= 2 * row_align:
            # Keep the grid >= 2 steps so a 2-TensorCore chip (v7x) can split it.
            blk = _round_up(pl.cdiv(rows, 2), row_align)
        grid = pl.cdiv(rows, blk)
        last_valid = rows - (grid - 1) * blk             # static; >= row_align

        # Reshape of the full contiguous array is a free bitcast; only a ragged
        # tail forces a (prefix-sized) slice.
        main = n_flat if main_elems == n_neg else n_flat[:main_elems]
        neg2d = main.reshape(rows, 128)

        kernel = _make_partial_kernel(blk, last_valid,
                                      _transcendental_dtype(in_dtype))
        partials = pl.pallas_call(
            kernel,
            out_shape=jax.ShapeDtypeStruct((grid * 8, 128), jnp.float32),
            grid=(grid,),
            in_specs=[pl.BlockSpec((blk, 128), lambda i: (i, 0))],
            out_specs=pl.BlockSpec((8, 128), lambda i: (i, 0)),
            compiler_params=pltpu.CompilerParams(
                dimension_semantics=("parallel",)),
        )(neg2d)
        total = total + jnp.sum(partials)

    return total / jnp.float32(n_pos + n_neg)


def softplus_loss_duale(pos_score, neg_score, *, num_neg, regularization,
                        regularization_two):
    """Full Softplus_Loss.forward for model_name == 'DualE'.

    pos_score = (p_score, pos_regul_1, pos_regul_2)
    neg_score = (n_score, neg_regul_1, neg_regul_2)
    """
    p_score, pos_regul_1, pos_regul_2 = pos_score
    n_score, neg_regul_1, neg_regul_2 = neg_score

    loss = softplus_score_mean(p_score, n_score)

    reg1 = (pos_regul_1 + neg_regul_1 * num_neg) / (num_neg + 1) * regularization
    reg2 = (pos_regul_2 + neg_regul_2 * num_neg) / (num_neg + 1) * regularization_two
    return loss + reg1 + reg2


def _reference(pos_score, neg_score, *, num_neg, regularization, regularization_two):
    p_score, pr1, pr2 = pos_score
    n_score, nr1, nr2 = neg_score
    score = jnp.concatenate([-p_score.reshape(-1), n_score.reshape(-1)])
    loss = jnp.mean(jax.nn.softplus(score))
    reg1 = (pr1 + nr1 * num_neg) / (num_neg + 1) * regularization
    reg2 = (pr2 + nr2 * num_neg) / (num_neg + 1) * regularization_two
    return loss + reg1 + reg2


if __name__ == "__main__":
    key = jax.random.PRNGKey(0)
    k1, k2, k3, k4, k5, k6, k7 = jax.random.split(key, 7)

    # DualE-style shapes: batch=64, num_neg=64 -> n_score has 4096 elements
    batch, num_neg = 64, 64
    regularization, regularization_two = 0.1, 0.05

    p_score = jax.random.normal(k1, (batch,), dtype=jnp.float32)
    n_score = jax.random.normal(k2, (batch * num_neg,), dtype=jnp.float32)
    reguls = jax.random.uniform(k3, (4,), dtype=jnp.float32)
    pos_score = (p_score, reguls[0], reguls[1])
    neg_score = (n_score, reguls[2], reguls[3])

    loss = softplus_loss_duale(
        pos_score, neg_score,
        num_neg=num_neg,
        regularization=regularization,
        regularization_two=regularization_two,
    )
    loss = jax.block_until_ready(loss)

    ref = _reference(
        pos_score, neg_score,
        num_neg=num_neg,
        regularization=regularization,
        regularization_two=regularization_two,
    )
    assert jnp.allclose(loss, ref, atol=1e-5, rtol=1e-5), (loss, ref)

    # Ragged sizes: exercises the partial-last-block mask branch + JAX tail.
    p2 = jax.random.normal(k4, (130,), dtype=jnp.float32)
    n2 = jax.random.normal(k5, (3333,), dtype=jnp.float32)
    m2 = jax.block_until_ready(softplus_score_mean(p2, n2))
    ref2 = jnp.mean(jax.nn.softplus(jnp.concatenate([-p2, n2])))
    assert jnp.allclose(m2, ref2, atol=1e-5, rtol=1e-5), (m2, ref2)

    # bf16 inputs: halve HBM bytes; exp/log1p stay bf16 on v6e/v7x, f32 elsewhere.
    p3 = jax.random.normal(k6, (64,), dtype=jnp.bfloat16)
    n3 = jax.random.normal(k7, (5000,), dtype=jnp.bfloat16)
    m3 = jax.block_until_ready(softplus_score_mean(p3, n3))
    ref3 = jnp.mean(jax.nn.softplus(
        jnp.concatenate([-p3.astype(jnp.float32), n3.astype(jnp.float32)])))
    assert jnp.allclose(m3, ref3, atol=3e-2, rtol=3e-2), (m3, ref3)

    print("KERNEL_OK")
</pallas_src>

<mosaic_0001>
module attributes {stable_mosaic.version = 11 : i64} {
  func.func @kernel(%arg0: i32, %arg1: memref<16x128xf32, #tpu.memory_space<vmem>>, %arg2: memref<8x128xf32, #tpu.memory_space<vmem>>) attributes {dimension_semantics = [#tpu.dimension_semantics<parallel>], iteration_bounds = array<i64: 2>, scalar_prefetch = 0 : i64, scratch_operands = 0 : i64, tpu.core_type = #tpu.core_type<tc>, window_params = [{transform_indices = @transform_0, window_bounds = array<i64: 16, 128>}, {transform_indices = @transform_1, window_bounds = array<i64: 8, 128>}]} {
    %c0 = arith.constant 0 : index
    %c0_0 = arith.constant 0 : index
    %0 = vector.load %arg1[%c0, %c0_0] : memref<16x128xf32, #tpu.memory_space<vmem>>, vector<16x128xf32>
    %cst = arith.constant 0.000000e+00 : f32
    %1 = vector.broadcast %cst : f32 to vector<16x128xf32>
    %2 = arith.maximumf %0, %1 : vector<16x128xf32>
    %3 = math.absf %0 : vector<16x128xf32>
    %cst_1 = arith.constant 0.000000e+00 : f32
    %4 = vector.broadcast %cst_1 : f32 to vector<16x128xf32>
    %5 = arith.subf %4, %3 : vector<16x128xf32>
    %6 = math.exp %5 : vector<16x128xf32>
    %7 = math.log1p %6 : vector<16x128xf32>
    %8 = arith.addf %2, %7 : vector<16x128xf32>
    %9 = vector.shape_cast %8 : vector<16x128xf32> to vector<2x8x128xf32>
    %cst_2 = arith.constant dense<0.000000e+00> : vector<8x128xf32>
    %10 = vector.multi_reduction <add>, %9, %cst_2 [0] : vector<2x8x128xf32> to vector<8x128xf32>
    %c0_3 = arith.constant 0 : index
    %c0_4 = arith.constant 0 : index
    %11 = vector.load %arg2[%c0_3, %c0_4] : memref<8x128xf32, #tpu.memory_space<vmem>>, vector<8x128xf32>
    tpu.vector_store %arg2[%c0_3, %c0_4], %10 {strides = array<i32>} : memref<8x128xf32, #tpu.memory_space<vmem>>, vector<8x128xf32>,
    return
  }
  func.func @transform_0(%arg0: i32) -> (i32, i32) {
    %c0_i32 = arith.constant 0 : i32
    %c0_i32_0 = arith.constant 0 : i32
    return %arg0, %c0_i32 : i32, i32
  }
  func.func @transform_1(%arg0: i32) -> (i32, i32) {
    %c0_i32 = arith.constant 0 : i32
    %c0_i32_0 = arith.constant 0 : i32
    return %arg0, %c0_i32 : i32, i32
  }
}

</mosaic_0001>

<bundles_post_ra>
// kernel: tpu_custom_call.1
= control target key start
LH: loop header
LB: loop body
LE: loop exit
PB: predicated region body
PF: predicated region fallthrough
CT: control target
= control target key end

     0   :  { %6 = vsyncpa [#allocation3], 0  ;;  %s597_s0 = inlined_call_operand.hbm [shape: f32[32,128], index: 0, kind: input, shape index: {}]   ;;  %s598_s1 = inlined_call_operand.hbm [shape: f32[16,128], index: 1, kind: output, shape index: {}]  }
   0x1   :  { %8 = vsyncpa [#allocation3 + $0x1], 0 }
   0x2   :  { %9 = vsyncpa [#allocation4], 0 }
   0x3   :  { %11 = vsyncpa [#allocation4 + $0x1], 0  ;;  %s436_s6 = smov 0   ;;  %s438_s7 = smov 0  }
   0x4   :  { %s440_s8 = smov 0   ;;  %s442_s9 = smov 0  }
   0x5 LB: > { %s457_s10 = sadd.s32 4294967295, %s420_s9   ;;  %s254_s11 = sadd.s32 4294967294, %s420_s9   ;;  %s420_s9 = sphi %s442_s9, %s611_s9   ;;  %s416_s8 = sphi %s440_s8, %s610_s8   ;;  %s412_s7 = sphi %s438_s7, %s609_s7   ;;  %s408_s6 = sphi %s436_s6, %s608_s6  }
   0x6   : > { %s461_s12 = sadd.s32 1, %s420_s9   ;;  %s24_s13 = sadd.s32 1, %s416_s8 }
   0x7   : > { %s21_s14 = ssub.s32 %s420_s9, %s461_s12  ;;  %p31_p0 = scmp.ne.s32.totalorder %s416_s8, %s412_s7 }
   0x8   : > { %p22_p1 = scmp.eq.s32.totalorder %s21_s14, 0  ;;  %p32_p2 = scmp.eq.s32.totalorder %s420_s9, 0 }
   0x9   : > { %p37_p3 = scmp.ne.s32.totalorder %s412_s7, %s408_s6  ;;  %p38_p4 = scmp.eq.s32.totalorder %s457_s10, 0 }
   0xa   : > { %s473_s15 = scalar_select %p22_p1, %s416_s8, %s24_s13  }
   0xb   : > { %p475_p5 = por %p32_p2, %p31_p0  ;;  %p479_p6 = por %p38_p4, %p37_p3 }
   0xc   : > { %p61_p7 = scmp.eq.s32.totalorder %s457_s10, 1  ;;  %p67_p8 = scmp.eq.s32.totalorder %s254_s11, 1 }
   0xd   : > { %p280_p10 = scmp.lt.s32.totalorder %s420_s9, 2  ;;  %s87_s20 = sand.u32 1, %s416_s8  }
   0xe   : > { %p486_p11 = por %p61_p7, %p31_p0  ;;  %p490_p12 = por %p67_p8, %p37_p3 }
   0xf   : > { %s267_s21 = sshll.u32 %s420_s9, 8  ;;  %s257_s22 = sshll.u32 %s87_s20, 4 }
  0x10   : > { %s602_s18 = scalar_select %p486_p11, 1, 0 }
  0x11   : > { %s603_s19 = scalar_select %p490_p12, 1, 0 }
  0x12   : > { %s499_s25 = scalar_lea.hbm %s597_s0, %s267_s21  ;;  %s91_s26 = scalar_lea.vmem [#allocation2], %s257_s22 }
  0x13   : > { %s98_s27 = sshll.u32 %s91_s26, 4  ;;  %p503_p13 = pnand %p280_p10, %p475_p5  ;;  %s507_s27 = int_to_ptr.vmem [resolvable:$true] %s98_s27 }
  0x14   : > { %s509_s29 = scalar_lea.sflag [#allocation3], %s87_s20  ;;  %s324_s30 = scalar_lea.hbm %s499_s25, 256 }
  0x15   : > { %p325_p0 = scmp.ne.s32.totalorder %s499_s25, %s324_s30  ;;  %p326_p1 = pneg %p503_p13 }
  0x16   : > { %s329_s4 = scalar_lea.hbm %s597_s0, 512  ;;  %p330_p4 = scmp.lt.u32.totalorder %s499_s25, %s597_s0 }
  0x17   : > { %p327_p2 = pnand %p326_p1, %p325_p0  ;;  %p331_p5 = scmp.lt.u32.totalorder %s329_s4, %s324_s30 }
  0x18   : > { %p333_p8 = scmp.lt.u32.totalorder %s324_s30, %s499_s25 }
  0x19   : > { %p328_p3 = pneg %p327_p2  ;;  %p332_p7 = por %p331_p5, %p330_p4 }
  0x1b   : > { %p334_p10 = por %p333_p8, %p332_p7 }
  0x1d   : > { %p335_p9 = pnand %p334_p10, %p328_p3 }
  0x1f   : > { %338 = shalt.err (!%p335_p9)
}
  0x20   : > { %s339_s13 = scalar_lea.vmem %s507_s27, 256  ;;  %s422_s14 = smov [#allocation2]  }
  0x21   : > { %p340_p0 = scmp.ne.s32.totalorder %s507_s27, %s339_s13  ;;  %s344_s16 = sshll.u32 %s422_s14, 4  ;;  %s345_s16 = int_to_ptr.vmem [resolvable:$false] %s344_s16 }
  0x22   : > { %s346_s20 = scalar_lea.vmem %s345_s16, 512  ;;  %p347_p11 = scmp.lt.s32.totalorder %s507_s27, %s345_s16 }
  0x23   : > { %p342_p2 = pnand %p340_p0, %p326_p1  ;;  %p348_p4 = scmp.lt.s32.totalorder %s346_s20, %s339_s13 }
  0x25   : > { %p343_p12 = pneg %p342_p2  ;;  %p349_p5 = por %p348_p4, %p347_p11 }
  0x27   : > { %p350_p7 = pnand %p349_p5, %p343_p12 }
  0x29   : > { %353 = shalt.err (!%p350_p7)
}
  0x2a   : > { %s423_s21 = smov 128   ;;  %s424_s22 = smov 8  }
  0x2b   : > { %275 = dma.hbm_to_vmem [thread:$0]  (!%p503_p13), %s499_s25, 256, %s507_s27, %s509_s29, %s423_s21, %s423_s21, %s424_s22  }
  0x2c   : > { %p260_p9 = scmp.ge.s32.totalorder %s420_s9, 1  ;;  %p106_p1 = scmp.lt.s32.totalorder %s420_s9, 3 }
  0x2e   : > { %p107_p3 = pnand %p260_p9, %p106_p1 }
  0x2f   : > { %s540_s23 = sand.u32 (!%p107_p3), 1, %s412_s7  }
  0x30   : > { %110 = sbr.rel (%p107_p3) target bundleno = 109 (0x6d), region = 24  ;;  %s261_s24 = sshll.u32 (!%p107_p3), %s540_s23, 4 }
  0x31   : > { %s113_s26 = scalar_lea.sflag (!%p107_p3), [#allocation3], %s540_s23  ;;  %s116_s30 = scalar_lea.vmem (!%p107_p3), [#allocation2], %s261_s24 }
  0x37   : > { %399 = dma.done.wait (%p479_p6), %s113_s26, 256  }
  0x38   : > { %401 = vsyncadd (%p479_p6), %s113_s26, 4294967040  ;;  %v136_v0 = vld [vmem:[%s116_s30] sm:$0xff]  ;;  %v137_v1 = vld [vmem:[%s116_s30 + $0x8] sm:$0xff]  ;;  %s262_s17 = sshll.u32 %s540_s23, 3  ;;  %s264_s28 = sshll.u32 %s457_s10, 7 }
  0x39   : > { %v140_v2 = vand.u32 2147483647, %v136_v0  ;;  %v141_v3 = vand.u32 2147483647, %v137_v1  ;;  %v138_v20 = vmax.f32 %v136_v0, 0.0  ;;  %v139_v23 = vmax.f32 %v137_v1, 0.0  ;;  %s555_s3 = scalar_lea.hbm %s598_s1, %s264_s28 }
  0x3a   : > { %s134_s25 = scalar_lea.vmem [#allocation5], %s262_s17  ;;  %s171_s4 = scalar_lea.sflag [#allocation4], %s540_s23 }
  0x3b   : > { %v142_v4 = vsub.f32 0.0, %v140_v2  ;;  %v143_v5 = vsub.f32 0.0, %v141_v3  ;;  %s184_s27 = sshll.u32 %s134_s25, 4  ;;  %p605_p11 = scmp.ne.s32.totalorder %s602_s18, 0  ;;  %s550_s27 = int_to_ptr.vmem [resolvable:$true] %s184_s27 }
  0x3c   : > { %s354_s5 = scalar_lea.vmem %s550_s27, 128  ;;  %s425_s10 = smov [#allocation5]  }
  0x3d   : > { %v144_v6 = vmul.f32 1.442695, %v142_v4  ;;  %v146_v7 = vmul.f32 1.442695, %v143_v5  ;;  %p355_p6 = scmp.ne.s32.totalorder %s550_s27, %s354_s5  ;;  %s358_s11 = sshll.u32 %s425_s10, 4  ;;  %s359_s11 = int_to_ptr.vmem [resolvable:$false] %s358_s11 }
  0x3e   : > { %s360_s13 = scalar_lea.vmem %s359_s11, 256  ;;  %p361_p8 = scmp.lt.s32.totalorder %s550_s27, %s359_s11 }
  0x3f   : > { %316 = vpow2.f32 %v144_v6  ;;  %p356_p12 = pnand %p355_p6, %p605_p11  ;;  %p362_p10 = scmp.lt.s32.totalorder %s360_s13, %s354_s5 }
  0x40   : > { %318 = vpow2.f32 %v146_v7 }
  0x41   : > { %p357_p13 = pneg %p356_p12  ;;  %p363_p0 = por %p362_p10, %p361_p8 }
  0x43   : > { %p364_p2 = pnand %p363_p0, %p357_p13 }
  0x49   : > { %v317_v8 = vpop.eup %316 }
  0x4a   : > { %v319_v9 = vpop.eup %318  ;;  %v148_v10 = vadd.f32 1.0, %v317_v8  ;;  %v151_v12 = vmul.f32 -0.5, %v317_v8  ;;  %v154_v15 = vand.u32 2147483647, %v317_v8 }
  0x4b   : > { %v157_v11 = vadd.f32 1.0, %v319_v9  ;;  %v160_v13 = vmul.f32 -0.5, %v319_v9  ;;  %v163_v17 = vand.u32 2147483647, %v319_v9 }
  0x4c   : > { %320 = vlog2.f32 %v148_v10  ;;  %v152_v14 = vadd.f32 1.0, %v151_v12  ;;  %vm155_vm0 = vcmp.lt.f32.partialorder %v154_v15, 0.0004427343 }
  0x4d   : > { %322 = vlog2.f32 %v157_v11  ;;  %v161_v16 = vadd.f32 1.0, %v160_v13  ;;  %vm164_vm1 = vcmp.lt.f32.partialorder %v163_v17, 0.0004427343 }
  0x4e   : > { %v153_v18 = vmul.f32 %v317_v8, %v152_v14 }
  0x4f   : > { %v162_v21 = vmul.f32 %v319_v9, %v161_v16 }
  0x56   : > { %v321_v19 = vpop.eup %320 }
  0x57   : > { %v323_v22 = vpop.eup %322  ;;  %v150_v24 = vmul.f32 0.6931472, %v321_v19 }
  0x58   : > { %v159_v25 = vmul.f32 0.6931472, %v323_v22 }
  0x59   : > { %v156_v26 = vsel %vm155_vm0, %v153_v18, %v150_v24 }
  0x5a   : > { %v165_v27 = vsel %vm164_vm1, %v162_v21, %v159_v25  ;;  %v166_v28 = vadd.f32 %v156_v26, %v138_v20 }
  0x5b   : > { %v167_v29 = vadd.f32 %v165_v27, %v139_v23 }
  0x5d   : > { %v168_v30 = vadd.f32 %v167_v29, %v166_v28 }
  0x5f   : > { %169 = vst [vmem:[%s134_s25] sm:$0xff] %v168_v30 }
  0x60   : > { %367 = shalt.err (!%p364_p2)
}
  0x61   : > { %s368_s14 = scalar_lea.hbm %s555_s3, 128  ;;  %s372_s21 = scalar_lea.hbm %s598_s1, 256 }
  0x62   : > { %p369_p4 = scmp.ne.s32.totalorder %s555_s3, %s368_s14  ;;  %p373_p9 = scmp.lt.u32.totalorder %s555_s3, %s598_s1 }
  0x63   : > { %p374_p1 = scmp.lt.u32.totalorder %s372_s21, %s368_s14  ;;  %p376_p6 = scmp.lt.u32.totalorder %s368_s14, %s555_s3 }
  0x64   : > { %p370_p5 = pnand %p369_p4, %p605_p11 }
  0x65   : > { %p375_p3 = por %p374_p1, %p373_p9 }
  0x66   : > { %p371_p7 = pneg %p370_p5 }
  0x67   : > { %p377_p12 = por %p376_p6, %p375_p3 }
  0x69   : > { %p378_p13 = pnand %p377_p12, %p371_p7 }
  0x6b   : > { %381 = shalt.err (!%p378_p13)
}
  0x6c   : > { %270 = dma.vmem_to_hbm [thread:$0]  (%p605_p11), %s550_s27, 128, %s555_s3, %s171_s4  }
  0x6d PF: > { %s196_s24 = sand.u32 1, %s408_s6   ;;  %p606_p8 = scmp.ne.s32.totalorder %s603_s19, 0 }
  0x6e   : > { %p607_p10 = scmp.ge.s32.totalorder %s420_s9, 2  ;;  %s197_s26 = scalar_lea.sflag [#allocation4], %s196_s24 }
  0x70   : > { %p277_p0 = pnand %p607_p10, %p606_p8 }
  0x72   : > { %403 = dma.done.wait (!%p277_p0), %s197_s26, 128  }
  0x73   : > { %405 = vsyncadd (!%p277_p0), %s197_s26, 4294967168  ;;  %p14_p2 = scmp.ge.s32.totalorder %s461_s12, 4   ;;  %s608_s6 = smov %s412_s7 }
  0x74   : > { %s609_s7 = smov %s416_s8  ;;  %s610_s8 = smov %s473_s15 }
  0x75   : > { %s611_s9 = smov %s461_s12  ;;  %16 = sbr.rel (!%p14_p2) target bundleno = 5 (0x5), region = 69 }
  0x7c   :  { %202 = vsyncpa [#allocation3], 1 }
  0x7d   :  { %204 = vsyncpa [#allocation3 + $0x1], 1 }
  0x7e   :  { %205 = vsyncpa [#allocation4], 1 }
  0x7f   :  { %207 = vsyncpa [#allocation4 + $0x1], 1 }

</bundles_post_ra>
